<compile_context>
chip_gen: v7x
topology: tpu7x:2x2x1
jax: 0.10.0
libtpu: 0.0.40
codegen_flags: <defaults>
</compile_context>

<pallas_src>
import jax
import jax.numpy as jnp
from jax.experimental import pallas as pl
from jax.experimental.pallas import tpu as pltpu

# ---------------- configuration (small, consistent with the module) ---------
B = 2               # batch
D = 32              # d_model
SEQ_LEN = 8         # in_features of mlp_1's first Linear == concat length
TEXT_TOPK = 2
L_TIME = SEQ_LEN - TEXT_TOPK   # time steps so that concat length == seq_len
C = 8               # compress_token
LN_EPS = 1e-5


def _layer_norm(x, gamma, beta, axis):
    mu = jnp.mean(x, axis=axis, keepdims=True)
    var = jnp.mean((x - mu) ** 2, axis=axis, keepdims=True)
    return (x - mu) * jax.lax.rsqrt(var + LN_EPS) * gamma + beta


def mixer_kernel(
    x_ref,                                   # (B, SEQ_LEN, D) concatenated input
    w1_ref, b1_ref, g1_ref, be1_ref,         # mlp_1 linear1: (C, SEQ_LEN), (C,1)x3
    w2_ref, b2_ref, g2_ref, be2_ref,         # mlp_1 linear2: (C, C), (C,1)x3
    w3_ref, b3_ref, g3_ref, be3_ref,         # mlp_2 linear1: (D, D) pre-T, (1,D)x3
    w4_ref, b4_ref, g4_ref, be4_ref,         # mlp_2 linear2: (D, D) pre-T, (1,D)x3
    o_ref,                                   # (B*C, D) output slab
):
    # Hoist all mlp_1 parameter loads once (reused across the static batch loop).
    w1 = w1_ref[...]
    w2 = w2_ref[...]
    b1 = b1_ref[...]
    g1 = g1_ref[...]
    be1 = be1_ref[...]
    b2 = b2_ref[...]
    g2 = g2_ref[...]
    be2 = be2_ref[...]

    # ---- mlp_1 in (C, D) orientation: u = W @ x_b  (no transposes needed) ----
    blocks = []
    for b in range(B):                                   # static loop, B=2
        xb = x_ref[b].astype(jnp.float32)                # (SEQ_LEN, D)
        u = jnp.dot(w1, xb, preferred_element_type=jnp.float32) + b1   # (C, D)
        u = jnp.maximum(u, 0.0)
        u = _layer_norm(u, g1, be1, axis=0)              # LN over compress_token
        v = jnp.dot(w2, u, preferred_element_type=jnp.float32) + b2    # (C, D)
        v = jnp.maximum(v, 0.0)
        v = _layer_norm(v, g2, be2, axis=0)
        blocks.append(v)

    # (C, D) per-batch result is already the post-permute layout mlp_2 expects.
    # Sublane concat (8-aligned) -> single (B*C, D) activation.
    z = jnp.concatenate(blocks, axis=0)                  # (B*C, D)

    # ---- mlp_2 on the batch-flattened activation (one matmul per layer) ----
    r = jnp.dot(z, w3_ref[...], preferred_element_type=jnp.float32) + b3_ref[...]
    r = jnp.maximum(r, 0.0)
    r = _layer_norm(r, g3_ref[...], be3_ref[...], axis=-1)
    s = jnp.dot(r, w4_ref[...], preferred_element_type=jnp.float32) + b4_ref[...]
    s = jnp.maximum(s, 0.0)
    s = _layer_norm(s, g4_ref[...], be4_ref[...], axis=-1)

    o_ref[...] = s.astype(o_ref.dtype)


def _full_spec(shape):
    nd = len(shape)
    return pl.BlockSpec(shape, lambda i, _nd=nd: (0,) * _nd)


def time_text_mixer_forward(x_time, x_text, params):
    """x_time: (B, L_TIME, D), x_text: (B, TEXT_TOPK, D). Returns (B, C, D)."""
    (W1, b1, g1, be1, W2, b2, g2, be2,
     W3, b3, g3, be3, W4, b4, g4, be4) = params

    # Host-side parameter prep: pre-transpose / pre-reshape so the kernel does
    # no transposes and no broadcasted reshapes.
    kparams = (
        W1, b1.reshape(C, 1), g1.reshape(C, 1), be1.reshape(C, 1),
        W2, b2.reshape(C, 1), g2.reshape(C, 1), be2.reshape(C, 1),
        W3.T, b3.reshape(1, D), g3.reshape(1, D), be3.reshape(1, D),
        W4.T, b4.reshape(1, D), g4.reshape(1, D), be4.reshape(1, D),
    )

    # concat(dim=1) is done once outside the kernel (tiny XLA copy).
    x = jnp.concatenate([x_time, x_text], axis=1)        # (B, SEQ_LEN, D)

    in_specs = [_full_spec(x.shape)] + [_full_spec(p.shape) for p in kparams]

    flops = (B * (2 * C * SEQ_LEN * D + 2 * C * C * D)   # mlp_1 matmuls
             + 2 * (2 * (B * C) * D * D))                # mlp_2 matmuls
    bytes_accessed = (sum(int(a.size) * 4 for a in (x,) + kparams)
                      + B * C * D * 4)
    transcendentals = 2 * B * D + 2 * B * C              # rsqrt count of the 4 LNs

    out = pl.pallas_call(
        mixer_kernel,
        out_shape=jax.ShapeDtypeStruct((B * C, D), jnp.float32),
        grid_spec=pltpu.PrefetchScalarGridSpec(
            num_scalar_prefetch=0,
            grid=(1,),                       # single step: everything fetched once
            in_specs=in_specs,
            out_specs=_full_spec((B * C, D)),
        ),
        compiler_params=pltpu.CompilerParams(
            dimension_semantics=("arbitrary",),
        ),
        cost_estimate=pl.CostEstimate(
            flops=flops,
            transcendentals=transcendentals,
            bytes_accessed=bytes_accessed,
        ),
    )(x, *kparams)
    return out.reshape(B, C, D)


def make_params(key):
    """Deterministic synthetic parameters in PyTorch layout."""
    ks = jax.random.split(key, 16)
    s = 0.1
    W1 = s * jax.random.normal(ks[0], (C, SEQ_LEN), jnp.float32)
    b1 = s * jax.random.normal(ks[1], (C,), jnp.float32)
    g1 = 1.0 + s * jax.random.normal(ks[2], (C,), jnp.float32)
    be1 = s * jax.random.normal(ks[3], (C,), jnp.float32)
    W2 = s * jax.random.normal(ks[4], (C, C), jnp.float32)
    b2 = s * jax.random.normal(ks[5], (C,), jnp.float32)
    g2 = 1.0 + s * jax.random.normal(ks[6], (C,), jnp.float32)
    be2 = s * jax.random.normal(ks[7], (C,), jnp.float32)
    W3 = s * jax.random.normal(ks[8], (D, D), jnp.float32)
    b3 = s * jax.random.normal(ks[9], (D,), jnp.float32)
    g3 = 1.0 + s * jax.random.normal(ks[10], (D,), jnp.float32)
    be3 = s * jax.random.normal(ks[11], (D,), jnp.float32)
    W4 = s * jax.random.normal(ks[12], (D, D), jnp.float32)
    b4 = s * jax.random.normal(ks[13], (D,), jnp.float32)
    g4 = 1.0 + s * jax.random.normal(ks[14], (D,), jnp.float32)
    be4 = s * jax.random.normal(ks[15], (D,), jnp.float32)
    return (W1, b1, g1, be1, W2, b2, g2, be2,
            W3, b3, g3, be3, W4, b4, g4, be4)


def reference_forward(x_time, x_text, params):
    """Pure-JAX mirror of the PyTorch module, for a correctness check."""
    (W1, b1, g1, be1, W2, b2, g2, be2,
     W3, b3, g3, be3, W4, b4, g4, be4) = params
    x = jnp.concatenate([x_time, x_text], axis=1)        # (B, SEQ_LEN, D)
    x = jnp.transpose(x, (0, 2, 1))                      # (B, D, SEQ_LEN)
    x = jnp.maximum(x @ W1.T + b1, 0.0)
    x = _layer_norm(x, g1, be1, axis=-1)
    x = jnp.maximum(x @ W2.T + b2, 0.0)
    x = _layer_norm(x, g2, be2, axis=-1)
    x = jnp.transpose(x, (0, 2, 1))                      # (B, C, D)
    x = jnp.maximum(x @ W3.T + b3, 0.0)
    x = _layer_norm(x, g3, be3, axis=-1)
    x = jnp.maximum(x @ W4.T + b4, 0.0)
    x = _layer_norm(x, g4, be4, axis=-1)
    return x


if __name__ == "__main__":
    key = jax.random.PRNGKey(0)
    k_time, k_text, k_p = jax.random.split(key, 3)
    x_time = jax.random.normal(k_time, (B, L_TIME, D), jnp.float32)
    x_text = jax.random.normal(k_text, (B, TEXT_TOPK, D), jnp.float32)
    params = make_params(k_p)

    out = time_text_mixer_forward(x_time, x_text, params)
    out = jax.block_until_ready(out)

    ref = reference_forward(x_time, x_text, params)
    assert out.shape == (B, C, D)
    assert jnp.allclose(out, ref, rtol=1e-4, atol=1e-4), "mismatch vs reference"

    print("KERNEL_OK")
</pallas_src>

<mosaic_0001>
module attributes {stable_mosaic.version = 11 : i64} {
  func.func @mixer_kernel(%arg0: i32, %arg1: memref<2x8x32xf32, #tpu.memory_space<vmem>>, %arg2: memref<8x8xf32, #tpu.memory_space<vmem>>, %arg3: memref<8x1xf32, #tpu.memory_space<vmem>>, %arg4: memref<8x1xf32, #tpu.memory_space<vmem>>, %arg5: memref<8x1xf32, #tpu.memory_space<vmem>>, %arg6: memref<8x8xf32, #tpu.memory_space<vmem>>, %arg7: memref<8x1xf32, #tpu.memory_space<vmem>>, %arg8: memref<8x1xf32, #tpu.memory_space<vmem>>, %arg9: memref<8x1xf32, #tpu.memory_space<vmem>>, %arg10: memref<32x32xf32, #tpu.memory_space<vmem>>, %arg11: memref<1x32xf32, #tpu.memory_space<vmem>>, %arg12: memref<1x32xf32, #tpu.memory_space<vmem>>, %arg13: memref<1x32xf32, #tpu.memory_space<vmem>>, %arg14: memref<32x32xf32, #tpu.memory_space<vmem>>, %arg15: memref<1x32xf32, #tpu.memory_space<vmem>>, %arg16: memref<1x32xf32, #tpu.memory_space<vmem>>, %arg17: memref<1x32xf32, #tpu.memory_space<vmem>>, %arg18: memref<16x32xf32, #tpu.memory_space<vmem>>) attributes {dimension_semantics = [#tpu.dimension_semantics<arbitrary>], iteration_bounds = array<i64: 1>, scalar_prefetch = 0 : i64, scratch_operands = 0 : i64, tpu.core_type = #tpu.core_type<tc>, window_params = [{pipeline_mode = #tpu.pipeline_mode<synchronous>, transform_indices = @transform_0, window_bounds = array<i64: 2, 8, 32>}, {pipeline_mode = #tpu.pipeline_mode<synchronous>, transform_indices = @transform_1, window_bounds = array<i64: 8, 8>}, {pipeline_mode = #tpu.pipeline_mode<synchronous>, transform_indices = @transform_2, window_bounds = array<i64: 8, 1>}, {pipeline_mode = #tpu.pipeline_mode<synchronous>, transform_indices = @transform_3, window_bounds = array<i64: 8, 1>}, {pipeline_mode = #tpu.pipeline_mode<synchronous>, transform_indices = @transform_4, window_bounds = array<i64: 8, 1>}, {pipeline_mode = #tpu.pipeline_mode<synchronous>, transform_indices = @transform_5, window_bounds = array<i64: 8, 8>}, {pipeline_mode = #tpu.pipeline_mode<synchronous>, transform_indices = @transform_6, window_bounds = array<i64: 8, 1>}, {pipeline_mode = #tpu.pipeline_mode<synchronous>, transform_indices = @transform_7, window_bounds = array<i64: 8, 1>}, {pipeline_mode = #tpu.pipeline_mode<synchronous>, transform_indices = @transform_8, window_bounds = array<i64: 8, 1>}, {pipeline_mode = #tpu.pipeline_mode<synchronous>, transform_indices = @transform_9, window_bounds = array<i64: 32, 32>}, {pipeline_mode = #tpu.pipeline_mode<synchronous>, transform_indices = @transform_10, window_bounds = array<i64: 1, 32>}, {pipeline_mode = #tpu.pipeline_mode<synchronous>, transform_indices = @transform_11, window_bounds = array<i64: 1, 32>}, {pipeline_mode = #tpu.pipeline_mode<synchronous>, transform_indices = @transform_12, window_bounds = array<i64: 1, 32>}, {pipeline_mode = #tpu.pipeline_mode<synchronous>, transform_indices = @transform_13, window_bounds = array<i64: 32, 32>}, {pipeline_mode = #tpu.pipeline_mode<synchronous>, transform_indices = @transform_14, window_bounds = array<i64: 1, 32>}, {pipeline_mode = #tpu.pipeline_mode<synchronous>, transform_indices = @transform_15, window_bounds = array<i64: 1, 32>}, {pipeline_mode = #tpu.pipeline_mode<synchronous>, transform_indices = @transform_16, window_bounds = array<i64: 1, 32>}, {pipeline_mode = #tpu.pipeline_mode<synchronous>, transform_indices = @transform_17, window_bounds = array<i64: 16, 32>}]} {
    %c0 = arith.constant 0 : index
    %c0_0 = arith.constant 0 : index
    %0 = vector.load %arg2[%c0, %c0_0] : memref<8x8xf32, #tpu.memory_space<vmem>>, vector<8x8xf32>
    %c0_1 = arith.constant 0 : index
    %c0_2 = arith.constant 0 : index
    %1 = vector.load %arg6[%c0_1, %c0_2] : memref<8x8xf32, #tpu.memory_space<vmem>>, vector<8x8xf32>
    %c0_3 = arith.constant 0 : index
    %c0_4 = arith.constant 0 : index
    %2 = vector.load %arg3[%c0_3, %c0_4] : memref<8x1xf32, #tpu.memory_space<vmem>>, vector<8x1xf32>
    %c0_5 = arith.constant 0 : index
    %c0_6 = arith.constant 0 : index
    %3 = vector.load %arg4[%c0_5, %c0_6] : memref<8x1xf32, #tpu.memory_space<vmem>>, vector<8x1xf32>
    %c0_7 = arith.constant 0 : index
    %c0_8 = arith.constant 0 : index
    %4 = vector.load %arg5[%c0_7, %c0_8] : memref<8x1xf32, #tpu.memory_space<vmem>>, vector<8x1xf32>
    %c0_9 = arith.constant 0 : index
    %c0_10 = arith.constant 0 : index
    %5 = vector.load %arg7[%c0_9, %c0_10] : memref<8x1xf32, #tpu.memory_space<vmem>>, vector<8x1xf32>
    %c0_11 = arith.constant 0 : index
    %c0_12 = arith.constant 0 : index
    %6 = vector.load %arg8[%c0_11, %c0_12] : memref<8x1xf32, #tpu.memory_space<vmem>>, vector<8x1xf32>
    %c0_13 = arith.constant 0 : index
    %c0_14 = arith.constant 0 : index
    %7 = vector.load %arg9[%c0_13, %c0_14] : memref<8x1xf32, #tpu.memory_space<vmem>>, vector<8x1xf32>
    %c0_15 = arith.constant 0 : index
    %c0_16 = arith.constant 0 : index
    %c0_17 = arith.constant 0 : index
    %8 = vector.load %arg1[%c0_15, %c0_16, %c0_17] : memref<2x8x32xf32, #tpu.memory_space<vmem>>, vector<1x8x32xf32>
    %9 = vector.shape_cast %8 : vector<1x8x32xf32> to vector<8x32xf32>
    %cst = arith.constant dense<0.000000e+00> : vector<8x32xf32>
    %10 = tpu.matmul %0, %9, %cst {dimension_numbers = #tpu.dot_dimension_numbers<[1], [0], [0], [1], [0, 0, 1, 1], [], []>} : vector<8x8xf32>, vector<8x32xf32>, vector<8x32xf32> -> vector<8x32xf32>
    %11 = vector.broadcast %2 : vector<8x1xf32> to vector<8x32xf32>
    %12 = arith.addf %10, %11 : vector<8x32xf32>
    %cst_18 = arith.constant 0.000000e+00 : f32
    %13 = vector.broadcast %cst_18 : f32 to vector<8x32xf32>
    %14 = arith.maximumf %12, %13 : vector<8x32xf32>
    %cst_19 = arith.constant dense<0.000000e+00> : vector<32xf32>
    %15 = vector.multi_reduction <add>, %14, %cst_19 [0] : vector<8x32xf32> to vector<32xf32>
    %16 = vector.shape_cast %15 : vector<32xf32> to vector<1x32xf32>
    %cst_20 = arith.constant 8.000000e+00 : f32
    %17 = vector.broadcast %cst_20 : f32 to vector<1x32xf32>
    %18 = arith.divf %16, %17 : vector<1x32xf32>
    %19 = vector.broadcast %18 : vector<1x32xf32> to vector<8x32xf32>
    %20 = arith.subf %14, %19 : vector<8x32xf32>
    %21 = arith.mulf %20, %20 : vector<8x32xf32>
    %cst_21 = arith.constant dense<0.000000e+00> : vector<32xf32>
    %22 = vector.multi_reduction <add>, %21, %cst_21 [0] : vector<8x32xf32> to vector<32xf32>
    %23 = vector.shape_cast %22 : vector<32xf32> to vector<1x32xf32>
    %cst_22 = arith.constant 8.000000e+00 : f32
    %24 = vector.broadcast %cst_22 : f32 to vector<1x32xf32>
    %25 = arith.divf %23, %24 : vector<1x32xf32>
    %26 = vector.broadcast %18 : vector<1x32xf32> to vector<8x32xf32>
    %27 = arith.subf %14, %26 : vector<8x32xf32>
    %cst_23 = arith.constant 9.99999974E-6 : f32
    %28 = vector.broadcast %cst_23 : f32 to vector<1x32xf32>
    %29 = arith.addf %25, %28 : vector<1x32xf32>
    %30 = math.rsqrt %29 : vector<1x32xf32>
    %31 = vector.broadcast %30 : vector<1x32xf32> to vector<8x32xf32>
    %32 = arith.mulf %27, %31 : vector<8x32xf32>
    %33 = vector.broadcast %3 : vector<8x1xf32> to vector<8x32xf32>
    %34 = arith.mulf %32, %33 : vector<8x32xf32>
    %35 = vector.broadcast %4 : vector<8x1xf32> to vector<8x32xf32>
    %36 = arith.addf %34, %35 : vector<8x32xf32>
    %cst_24 = arith.constant dense<0.000000e+00> : vector<8x32xf32>
    %37 = tpu.matmul %1, %36, %cst_24 {dimension_numbers = #tpu.dot_dimension_numbers<[1], [0], [0], [1], [0, 0, 1, 1], [], []>} : vector<8x8xf32>, vector<8x32xf32>, vector<8x32xf32> -> vector<8x32xf32>
    %38 = vector.broadcast %5 : vector<8x1xf32> to vector<8x32xf32>
    %39 = arith.addf %37, %38 : vector<8x32xf32>
    %cst_25 = arith.constant 0.000000e+00 : f32
    %40 = vector.broadcast %cst_25 : f32 to vector<8x32xf32>
    %41 = arith.maximumf %39, %40 : vector<8x32xf32>
    %cst_26 = arith.constant dense<0.000000e+00> : vector<32xf32>
    %42 = vector.multi_reduction <add>, %41, %cst_26 [0] : vector<8x32xf32> to vector<32xf32>
    %43 = vector.shape_cast %42 : vector<32xf32> to vector<1x32xf32>
    %cst_27 = arith.constant 8.000000e+00 : f32
    %44 = vector.broadcast %cst_27 : f32 to vector<1x32xf32>
    %45 = arith.divf %43, %44 : vector<1x32xf32>
    %46 = vector.broadcast %45 : vector<1x32xf32> to vector<8x32xf32>
    %47 = arith.subf %41, %46 : vector<8x32xf32>
    %48 = arith.mulf %47, %47 : vector<8x32xf32>
    %cst_28 = arith.constant dense<0.000000e+00> : vector<32xf32>
    %49 = vector.multi_reduction <add>, %48, %cst_28 [0] : vector<8x32xf32> to vector<32xf32>
    %50 = vector.shape_cast %49 : vector<32xf32> to vector<1x32xf32>
    %cst_29 = arith.constant 8.000000e+00 : f32
    %51 = vector.broadcast %cst_29 : f32 to vector<1x32xf32>
    %52 = arith.divf %50, %51 : vector<1x32xf32>
    %53 = vector.broadcast %45 : vector<1x32xf32> to vector<8x32xf32>
    %54 = arith.subf %41, %53 : vector<8x32xf32>
    %cst_30 = arith.constant 9.99999974E-6 : f32
    %55 = vector.broadcast %cst_30 : f32 to vector<1x32xf32>
    %56 = arith.addf %52, %55 : vector<1x32xf32>
    %57 = math.rsqrt %56 : vector<1x32xf32>
    %58 = vector.broadcast %57 : vector<1x32xf32> to vector<8x32xf32>
    %59 = arith.mulf %54, %58 : vector<8x32xf32>
    %60 = vector.broadcast %6 : vector<8x1xf32> to vector<8x32xf32>
    %61 = arith.mulf %59, %60 : vector<8x32xf32>
    %62 = vector.broadcast %7 : vector<8x1xf32> to vector<8x32xf32>
    %63 = arith.addf %61, %62 : vector<8x32xf32>
    %c1 = arith.constant 1 : index
    %c0_31 = arith.constant 0 : index
    %c0_32 = arith.constant 0 : index
    %64 = vector.load %arg1[%c1, %c0_31, %c0_32] : memref<2x8x32xf32, #tpu.memory_space<vmem>>, vector<1x8x32xf32>
    %65 = vector.shape_cast %64 : vector<1x8x32xf32> to vector<8x32xf32>
    %cst_33 = arith.constant dense<0.000000e+00> : vector<8x32xf32>
    %66 = tpu.matmul %0, %65, %cst_33 {dimension_numbers = #tpu.dot_dimension_numbers<[1], [0], [0], [1], [0, 0, 1, 1], [], []>} : vector<8x8xf32>, vector<8x32xf32>, vector<8x32xf32> -> vector<8x32xf32>
    %67 = vector.broadcast %2 : vector<8x1xf32> to vector<8x32xf32>
    %68 = arith.addf %66, %67 : vector<8x32xf32>
    %cst_34 = arith.constant 0.000000e+00 : f32
    %69 = vector.broadcast %cst_34 : f32 to vector<8x32xf32>
    %70 = arith.maximumf %68, %69 : vector<8x32xf32>
    %cst_35 = arith.constant dense<0.000000e+00> : vector<32xf32>
    %71 = vector.multi_reduction <add>, %70, %cst_35 [0] : vector<8x32xf32> to vector<32xf32>
    %72 = vector.shape_cast %71 : vector<32xf32> to vector<1x32xf32>
    %cst_36 = arith.constant 8.000000e+00 : f32
    %73 = vector.broadcast %cst_36 : f32 to vector<1x32xf32>
    %74 = arith.divf %72, %73 : vector<1x32xf32>
    %75 = vector.broadcast %74 : vector<1x32xf32> to vector<8x32xf32>
    %76 = arith.subf %70, %75 : vector<8x32xf32>
    %77 = arith.mulf %76, %76 : vector<8x32xf32>
    %cst_37 = arith.constant dense<0.000000e+00> : vector<32xf32>
    %78 = vector.multi_reduction <add>, %77, %cst_37 [0] : vector<8x32xf32> to vector<32xf32>
    %79 = vector.shape_cast %78 : vector<32xf32> to vector<1x32xf32>
    %cst_38 = arith.constant 8.000000e+00 : f32
    %80 = vector.broadcast %cst_38 : f32 to vector<1x32xf32>
    %81 = arith.divf %79, %80 : vector<1x32xf32>
    %82 = vector.broadcast %74 : vector<1x32xf32> to vector<8x32xf32>
    %83 = arith.subf %70, %82 : vector<8x32xf32>
    %cst_39 = arith.constant 9.99999974E-6 : f32
    %84 = vector.broadcast %cst_39 : f32 to vector<1x32xf32>
    %85 = arith.addf %81, %84 : vector<1x32xf32>
    %86 = math.rsqrt %85 : vector<1x32xf32>
    %87 = vector.broadcast %86 : vector<1x32xf32> to vector<8x32xf32>
    %88 = arith.mulf %83, %87 : vector<8x32xf32>
    %89 = vector.broadcast %3 : vector<8x1xf32> to vector<8x32xf32>
    %90 = arith.mulf %88, %89 : vector<8x32xf32>
    %91 = vector.broadcast %4 : vector<8x1xf32> to vector<8x32xf32>
    %92 = arith.addf %90, %91 : vector<8x32xf32>
    %cst_40 = arith.constant dense<0.000000e+00> : vector<8x32xf32>
    %93 = tpu.matmul %1, %92, %cst_40 {dimension_numbers = #tpu.dot_dimension_numbers<[1], [0], [0], [1], [0, 0, 1, 1], [], []>} : vector<8x8xf32>, vector<8x32xf32>, vector<8x32xf32> -> vector<8x32xf32>
    %94 = vector.broadcast %5 : vector<8x1xf32> to vector<8x32xf32>
    %95 = arith.addf %93, %94 : vector<8x32xf32>
    %cst_41 = arith.constant 0.000000e+00 : f32
    %96 = vector.broadcast %cst_41 : f32 to vector<8x32xf32>
    %97 = arith.maximumf %95, %96 : vector<8x32xf32>
    %cst_42 = arith.constant dense<0.000000e+00> : vector<32xf32>
    %98 = vector.multi_reduction <add>, %97, %cst_42 [0] : vector<8x32xf32> to vector<32xf32>
    %99 = vector.shape_cast %98 : vector<32xf32> to vector<1x32xf32>
    %cst_43 = arith.constant 8.000000e+00 : f32
    %100 = vector.broadcast %cst_43 : f32 to vector<1x32xf32>
    %101 = arith.divf %99, %100 : vector<1x32xf32>
    %102 = vector.broadcast %101 : vector<1x32xf32> to vector<8x32xf32>
    %103 = arith.subf %97, %102 : vector<8x32xf32>
    %104 = arith.mulf %103, %103 : vector<8x32xf32>
    %cst_44 = arith.constant dense<0.000000e+00> : vector<32xf32>
    %105 = vector.multi_reduction <add>, %104, %cst_44 [0] : vector<8x32xf32> to vector<32xf32>
    %106 = vector.shape_cast %105 : vector<32xf32> to vector<1x32xf32>
    %cst_45 = arith.constant 8.000000e+00 : f32
    %107 = vector.broadcast %cst_45 : f32 to vector<1x32xf32>
    %108 = arith.divf %106, %107 : vector<1x32xf32>
    %109 = vector.broadcast %101 : vector<1x32xf32> to vector<8x32xf32>
    %110 = arith.subf %97, %109 : vector<8x32xf32>
    %cst_46 = arith.constant 9.99999974E-6 : f32
    %111 = vector.broadcast %cst_46 : f32 to vector<1x32xf32>
    %112 = arith.addf %108, %111 : vector<1x32xf32>
    %113 = math.rsqrt %112 : vector<1x32xf32>
    %114 = vector.broadcast %113 : vector<1x32xf32> to vector<8x32xf32>
    %115 = arith.mulf %110, %114 : vector<8x32xf32>
    %116 = vector.broadcast %6 : vector<8x1xf32> to vector<8x32xf32>
    %117 = arith.mulf %115, %116 : vector<8x32xf32>
    %118 = vector.broadcast %7 : vector<8x1xf32> to vector<8x32xf32>
    %119 = arith.addf %117, %118 : vector<8x32xf32>
    %120 = tpu.concatenate %63, %119 in 0 : vector<8x32xf32>, vector<8x32xf32> -> vector<16x32xf32>
    %c0_47 = arith.constant 0 : index
    %c0_48 = arith.constant 0 : index
    %121 = vector.load %arg10[%c0_47, %c0_48] : memref<32x32xf32, #tpu.memory_space<vmem>>, vector<32x32xf32>
    %cst_49 = arith.constant dense<0.000000e+00> : vector<16x32xf32>
    %122 = tpu.matmul %120, %121, %cst_49 {dimension_numbers = #tpu.dot_dimension_numbers<[1], [0], [0], [1], [0, 0, 1, 1], [], []>} : vector<16x32xf32>, vector<32x32xf32>, vector<16x32xf32> -> vector<16x32xf32>
    %c0_50 = arith.constant 0 : index
    %c0_51 = arith.constant 0 : index
    %123 = vector.load %arg11[%c0_50, %c0_51] : memref<1x32xf32, #tpu.memory_space<vmem>>, vector<1x32xf32>
    %124 = vector.broadcast %123 : vector<1x32xf32> to vector<16x32xf32>
    %125 = arith.addf %122, %124 : vector<16x32xf32>
    %cst_52 = arith.constant 0.000000e+00 : f32
    %126 = vector.broadcast %cst_52 : f32 to vector<16x32xf32>
    %127 = arith.maximumf %125, %126 : vector<16x32xf32>
    %c0_53 = arith.constant 0 : index
    %c0_54 = arith.constant 0 : index
    %128 = vector.load %arg12[%c0_53, %c0_54] : memref<1x32xf32, #tpu.memory_space<vmem>>, vector<1x32xf32>
    %c0_55 = arith.constant 0 : index
    %c0_56 = arith.constant 0 : index
    %129 = vector.load %arg13[%c0_55, %c0_56] : memref<1x32xf32, #tpu.memory_space<vmem>>, vector<1x32xf32>
    %cst_57 = arith.constant dense<0.000000e+00> : vector<16xf32>
    %130 = vector.multi_reduction <add>, %127, %cst_57 [1] : vector<16x32xf32> to vector<16xf32>
    %131 = vector.shape_cast %130 : vector<16xf32> to vector<16x1xf32>
    %cst_58 = arith.constant 3.200000e+01 : f32
    %132 = vector.broadcast %cst_58 : f32 to vector<16x1xf32>
    %133 = arith.divf %131, %132 : vector<16x1xf32>
    %134 = vector.broadcast %133 : vector<16x1xf32> to vector<16x32xf32>
    %135 = arith.subf %127, %134 : vector<16x32xf32>
    %136 = arith.mulf %135, %135 : vector<16x32xf32>
    %cst_59 = arith.constant dense<0.000000e+00> : vector<16xf32>
    %137 = vector.multi_reduction <add>, %136, %cst_59 [1] : vector<16x32xf32> to vector<16xf32>
    %138 = vector.shape_cast %137 : vector<16xf32> to vector<16x1xf32>
    %cst_60 = arith.constant 3.200000e+01 : f32
    %139 = vector.broadcast %cst_60 : f32 to vector<16x1xf32>
    %140 = arith.divf %138, %139 : vector<16x1xf32>
    %141 = vector.broadcast %133 : vector<16x1xf32> to vector<16x32xf32>
    %142 = arith.subf %127, %141 : vector<16x32xf32>
    %cst_61 = arith.constant 9.99999974E-6 : f32
    %143 = vector.broadcast %cst_61 : f32 to vector<16x1xf32>
    %144 = arith.addf %140, %143 : vector<16x1xf32>
    %145 = math.rsqrt %144 : vector<16x1xf32>
    %146 = vector.broadcast %145 : vector<16x1xf32> to vector<16x32xf32>
    %147 = arith.mulf %142, %146 : vector<16x32xf32>
    %148 = vector.broadcast %128 : vector<1x32xf32> to vector<16x32xf32>
    %149 = arith.mulf %147, %148 : vector<16x32xf32>
    %150 = vector.broadcast %129 : vector<1x32xf32> to vector<16x32xf32>
    %151 = arith.addf %149, %150 : vector<16x32xf32>
    %c0_62 = arith.constant 0 : index
    %c0_63 = arith.constant 0 : index
    %152 = vector.load %arg14[%c0_62, %c0_63] : memref<32x32xf32, #tpu.memory_space<vmem>>, vector<32x32xf32>
    %cst_64 = arith.constant dense<0.000000e+00> : vector<16x32xf32>
    %153 = tpu.matmul %151, %152, %cst_64 {dimension_numbers = #tpu.dot_dimension_numbers<[1], [0], [0], [1], [0, 0, 1, 1], [], []>} : vector<16x32xf32>, vector<32x32xf32>, vector<16x32xf32> -> vector<16x32xf32>
    %c0_65 = arith.constant 0 : index
    %c0_66 = arith.constant 0 : index
    %154 = vector.load %arg15[%c0_65, %c0_66] : memref<1x32xf32, #tpu.memory_space<vmem>>, vector<1x32xf32>
    %155 = vector.broadcast %154 : vector<1x32xf32> to vector<16x32xf32>
    %156 = arith.addf %153, %155 : vector<16x32xf32>
    %cst_67 = arith.constant 0.000000e+00 : f32
    %157 = vector.broadcast %cst_67 : f32 to vector<16x32xf32>
    %158 = arith.maximumf %156, %157 : vector<16x32xf32>
    %c0_68 = arith.constant 0 : index
    %c0_69 = arith.constant 0 : index
    %159 = vector.load %arg16[%c0_68, %c0_69] : memref<1x32xf32, #tpu.memory_space<vmem>>, vector<1x32xf32>
    %c0_70 = arith.constant 0 : index
    %c0_71 = arith.constant 0 : index
    %160 = vector.load %arg17[%c0_70, %c0_71] : memref<1x32xf32, #tpu.memory_space<vmem>>, vector<1x32xf32>
    %cst_72 = arith.constant dense<0.000000e+00> : vector<16xf32>
    %161 = vector.multi_reduction <add>, %158, %cst_72 [1] : vector<16x32xf32> to vector<16xf32>
    %162 = vector.shape_cast %161 : vector<16xf32> to vector<16x1xf32>
    %cst_73 = arith.constant 3.200000e+01 : f32
    %163 = vector.broadcast %cst_73 : f32 to vector<16x1xf32>
    %164 = arith.divf %162, %163 : vector<16x1xf32>
    %165 = vector.broadcast %164 : vector<16x1xf32> to vector<16x32xf32>
    %166 = arith.subf %158, %165 : vector<16x32xf32>
    %167 = arith.mulf %166, %166 : vector<16x32xf32>
    %cst_74 = arith.constant dense<0.000000e+00> : vector<16xf32>
    %168 = vector.multi_reduction <add>, %167, %cst_74 [1] : vector<16x32xf32> to vector<16xf32>
    %169 = vector.shape_cast %168 : vector<16xf32> to vector<16x1xf32>
    %cst_75 = arith.constant 3.200000e+01 : f32
    %170 = vector.broadcast %cst_75 : f32 to vector<16x1xf32>
    %171 = arith.divf %169, %170 : vector<16x1xf32>
    %172 = vector.broadcast %164 : vector<16x1xf32> to vector<16x32xf32>
    %173 = arith.subf %158, %172 : vector<16x32xf32>
    %cst_76 = arith.constant 9.99999974E-6 : f32
    %174 = vector.broadcast %cst_76 : f32 to vector<16x1xf32>
    %175 = arith.addf %171, %174 : vector<16x1xf32>
    %176 = math.rsqrt %175 : vector<16x1xf32>
    %177 = vector.broadcast %176 : vector<16x1xf32> to vector<16x32xf32>
    %178 = arith.mulf %173, %177 : vector<16x32xf32>
    %179 = vector.broadcast %159 : vector<1x32xf32> to vector<16x32xf32>
    %180 = arith.mulf %178, %179 : vector<16x32xf32>
    %181 = vector.broadcast %160 : vector<1x32xf32> to vector<16x32xf32>
    %182 = arith.addf %180, %181 : vector<16x32xf32>
    %c0_77 = arith.constant 0 : index
    %c0_78 = arith.constant 0 : index
    %183 = vector.load %arg18[%c0_77, %c0_78] : memref<16x32xf32, #tpu.memory_space<vmem>>, vector<16x32xf32>
    tpu.vector_store %arg18[%c0_77, %c0_78], %182 {strides = array<i32>} : memref<16x32xf32, #tpu.memory_space<vmem>>, vector<16x32xf32>,
    return
  }
  func.func @transform_0(%arg0: i32) -> (i32, i32, i32) {
    %c0_i32 = arith.constant 0 : i32
    %c0_i32_0 = arith.constant 0 : i32
    %c0_i32_1 = arith.constant 0 : i32
    %c0_i32_2 = arith.constant 0 : i32
    return %c0_i32, %c0_i32_0, %c0_i32_1 : i32, i32, i32
  }
  func.func @transform_1(%arg0: i32) -> (i32, i32) {
    %c0_i32 = arith.constant 0 : i32
    %c0_i32_0 = arith.constant 0 : i32
    %c0_i32_1 = arith.constant 0 : i32
    return %c0_i32, %c0_i32_0 : i32, i32
  }
  func.func @transform_2(%arg0: i32) -> (i32, i32) {
    %c0_i32 = arith.constant 0 : i32
    %c0_i32_0 = arith.constant 0 : i32
    %c0_i32_1 = arith.constant 0 : i32
    return %c0_i32, %c0_i32_0 : i32, i32
  }
  func.func @transform_3(%arg0: i32) -> (i32, i32) {
    %c0_i32 = arith.constant 0 : i32
    %c0_i32_0 = arith.constant 0 : i32
    %c0_i32_1 = arith.constant 0 : i32
    return %c0_i32, %c0_i32_0 : i32, i32
  }
  func.func @transform_4(%arg0: i32) -> (i32, i32) {
    %c0_i32 = arith.constant 0 : i32
    %c0_i32_0 = arith.constant 0 : i32
    %c0_i32_1 = arith.constant 0 : i32
    return %c0_i32, %c0_i32_0 : i32, i32
  }
  func.func @transform_5(%arg0: i32) -> (i32, i32) {
    %c0_i32 = arith.constant 0 : i32
    %c0_i32_0 = arith.constant 0 : i32
    %c0_i32_1 = arith.constant 0 : i32
    return %c0_i32, %c0_i32_0 : i32, i32
  }
  func.func @transform_6(%arg0: i32) -> (i32, i32) {
    %c0_i32 = arith.constant 0 : i32
    %c0_i32_0 = arith.constant 0 : i32
    %c0_i32_1 = arith.constant 0 : i32
    return %c0_i32, %c0_i32_0 : i32, i32
  }
  func.func @transform_7(%arg0: i32) -> (i32, i32) {
    %c0_i32 = arith.constant 0 : i32
    %c0_i32_0 = arith.constant 0 : i32
    %c0_i32_1 = arith.constant 0 : i32
    return %c0_i32, %c0_i32_0 : i32, i32
  }
  func.func @transform_8(%arg0: i32) -> (i32, i32) {
    %c0_i32 = arith.constant 0 : i32
    %c0_i32_0 = arith.constant 0 : i32
    %c0_i32_1 = arith.constant 0 : i32
    return %c0_i32, %c0_i32_0 : i32, i32
  }
  func.func @transform_9(%arg0: i32) -> (i32, i32) {
    %c0_i32 = arith.constant 0 : i32
    %c0_i32_0 = arith.constant 0 : i32
    %c0_i32_1 = arith.constant 0 : i32
    return %c0_i32, %c0_i32_0 : i32, i32
  }
  func.func @transform_10(%arg0: i32) -> (i32, i32) {
    %c0_i32 = arith.constant 0 : i32
    %c0_i32_0 = arith.constant 0 : i32
    %c0_i32_1 = arith.constant 0 : i32
    return %c0_i32, %c0_i32_0 : i32, i32
  }
  func.func @transform_11(%arg0: i32) -> (i32, i32) {
    %c0_i32 = arith.constant 0 : i32
    %c0_i32_0 = arith.constant 0 : i32
    %c0_i32_1 = arith.constant 0 : i32
    return %c0_i32, %c0_i32_0 : i32, i32
  }
  func.func @transform_12(%arg0: i32) -> (i32, i32) {
    %c0_i32 = arith.constant 0 : i32
    %c0_i32_0 = arith.constant 0 : i32
    %c0_i32_1 = arith.constant 0 : i32
    return %c0_i32, %c0_i32_0 : i32, i32
  }
  func.func @transform_13(%arg0: i32) -> (i32, i32) {
    %c0_i32 = arith.constant 0 : i32
    %c0_i32_0 = arith.constant 0 : i32
    %c0_i32_1 = arith.constant 0 : i32
    return %c0_i32, %c0_i32_0 : i32, i32
  }
  func.func @transform_14(%arg0: i32) -> (i32, i32) {
    %c0_i32 = arith.constant 0 : i32
    %c0_i32_0 = arith.constant 0 : i32
    %c0_i32_1 = arith.constant 0 : i32
    return %c0_i32, %c0_i32_0 : i32, i32
  }
  func.func @transform_15(%arg0: i32) -> (i32, i32) {
    %c0_i32 = arith.constant 0 : i32
    %c0_i32_0 = arith.constant 0 : i32
    %c0_i32_1 = arith.constant 0 : i32
    return %c0_i32, %c0_i32_0 : i32, i32
  }
  func.func @transform_16(%arg0: i32) -> (i32, i32) {
    %c0_i32 = arith.constant 0 : i32
    %c0_i32_0 = arith.constant 0 : i32
    %c0_i32_1 = arith.constant 0 : i32
    return %c0_i32, %c0_i32_0 : i32, i32
  }
  func.func @transform_17(%arg0: i32) -> (i32, i32) {
    %c0_i32 = arith.constant 0 : i32
    %c0_i32_0 = arith.constant 0 : i32
    %c0_i32_1 = arith.constant 0 : i32
    return %c0_i32, %c0_i32_0 : i32, i32
  }
}

</mosaic_0001>

<bundles_post_ra>
// kernel: tpu_custom_call.1
= control target key start
LH: loop header
LB: loop body
LE: loop exit
PB: predicated region body
PF: predicated region fallthrough
CT: control target
= control target key end

     0   :  { %s1237_s0 = inlined_call_operand.hbm [shape: f32[2,8,32], index: 0, kind: input, shape index: {}]   ;;  %s1238_s1 = inlined_call_operand.hbm [shape: f32[8,8], index: 1, kind: input, shape index: {}]   ;;  %s1239_s2 = inlined_call_operand.vmem [shape: f32[8,1], index: 2, kind: input, shape index: {}]   ;;  %s1240_s3 = inlined_call_operand.vmem [shape: f32[8,1], index: 3, kind: input, shape index: {}]   ;;  %s1241_s4 = inlined_call_operand.vmem [shape: f32[8,1], index: 4, kind: input, shape index: {}]   ;;  %s1242_s5 = inlined_call_operand.vmem [shape: f32[8,8], index: 5, kind: input, shape index: {}]   ;;  %s1243_s6 = inlined_call_operand.vmem [shape: f32[8,1], index: 6, kind: input, shape index: {}]   ;;  %s1244_s7 = inlined_call_operand.vmem [shape: f32[8,1], index: 7, kind: input, shape index: {}]   ;;  %s1245_s8 = inlined_call_operand.vmem [shape: f32[8,1], index: 8, kind: input, shape index: {}]   ;;  %s1246_s9 = inlined_call_operand.vmem [shape: f32[32,32], index: 9, kind: input, shape index: {}]   ;;  %s1247_s10 = inlined_call_operand.vmem [shape: f32[1,32], index: 10, kind: input, shape index: {}]   ;;  %s1248_s11 = inlined_call_operand.vmem [shape: f32[1,32], index: 11, kind: input, shape index: {}]   ;;  %s1249_s12 = inlined_call_operand.vmem [shape: f32[1,32], index: 12, kind: input, shape index: {}]   ;;  %s1250_s13 = inlined_call_operand.vmem [shape: f32[32,32], index: 13, kind: input, shape index: {}]   ;;  %s1251_s14 = inlined_call_operand.vmem [shape: f32[1,32], index: 14, kind: input, shape index: {}]   ;;  %s1252_s15 = inlined_call_operand.vmem [shape: f32[1,32], index: 15, kind: input, shape index: {}]   ;;  %s1253_s16 = inlined_call_operand.vmem [shape: f32[1,32], index: 16, kind: input, shape index: {}]   ;;  %s1254_s17 = inlined_call_operand.hbm [shape: f32[16,32], index: 17, kind: output, shape index: {}]  }
   0x1   :  { %1258 = sst [smem:[#allocation11_spill]] %s1237_s0 }
   0x2   :  { %1259 = sst [smem:[#allocation12_spill]] %s1238_s1 }
   0x3   :  { %1260 = sst [smem:[#allocation13_spill]] %s1253_s16 }
   0x4   :  { %1261 = sst [smem:[#allocation14_spill]] %s1254_s17 }
   0x5   :  { %22 = vsyncpa [#allocation3], 0 }
   0x6   :  { %23 = vsyncpa [#allocation6], 0 }
   0x7   :  { %24 = vsyncpa [#allocation4], 0  ;;  %s996_s24 = smov [#allocation2]   ;;  %s1262_s28 = sld [smem:[#allocation11_spill]] }
   0x8   :  { %s30_s25 = sshll.u32 %s996_s24, 4  ;;  %s31_s25 = int_to_ptr.vmem [resolvable:$true] %s30_s25 }
   0xd   :  { %s924_s29 = scalar_lea.hbm %s1262_s28, 256 }
   0xe   :  { %p925_p0 = scmp.ne.s32.totalorder %s1262_s28, %s924_s29  ;;  %p928_p1 = scmp.lt.u32.totalorder %s924_s29, %s1262_s28 }
  0x10   :  { %p930_p2 = pnand %p928_p1, %p925_p0 }
  0x12   :  { %933 = shalt.err (!%p930_p2)
}
  0x13   :  { %s934_s1 = scalar_lea.vmem %s31_s25, 256  ;;  %p939_p4 = scmp.lt.s32.totalorder %s31_s25, %s31_s25 }
  0x14   :  { %p935_p3 = scmp.ne.s32.totalorder %s31_s25, %s934_s1  ;;  %p940_p5 = scmp.lt.s32.totalorder %s934_s1, %s934_s1 }
  0x16   :  { %p941_p6 = por %p940_p5, %p939_p4 }
  0x18   :  { %p942_p7 = pnand %p941_p6, %p935_p3 }
  0x1a   :  { %945 = shalt.err (!%p942_p7)
}
  0x1b   :  { %s997_s20 = smov 128   ;;  %s998_s21 = smov 8  }
  0x1c   :  { %36 = dma.hbm_to_vmem [thread:$0]  %s1262_s28, 256, %s31_s25, [#allocation3], %s997_s20, %s997_s20, %s998_s21  }
  0x1d   :  { %s999_s24 = smov [#allocation5]   ;;  %s1263_s0 = sld [smem:[#allocation12_spill]] }
  0x1e   :  { %s43_s26 = sshll.u32 %s999_s24, 4  ;;  %s44_s26 = int_to_ptr.vmem [resolvable:$true] %s43_s26 }
  0x23   :  { %s946_s30 = scalar_lea.hbm %s1263_s0, 128 }
  0x24   :  { %p947_p8 = scmp.ne.s32.totalorder %s1263_s0, %s946_s30  ;;  %p950_p9 = scmp.lt.u32.totalorder %s946_s30, %s1263_s0 }
  0x26   :  { %p952_p10 = pnand %p950_p9, %p947_p8 }
  0x28   :  { %955 = shalt.err (!%p952_p10)
}
  0x29   :  { %s956_s16 = scalar_lea.vmem %s44_s26, 128  ;;  %p961_p12 = scmp.lt.s32.totalorder %s44_s26, %s44_s26 }
  0x2a   :  { %p957_p11 = scmp.ne.s32.totalorder %s44_s26, %s956_s16  ;;  %p962_p13 = scmp.lt.s32.totalorder %s956_s16, %s956_s16 }
  0x2c   :  { %p963_p0 = por %p962_p13, %p961_p12 }
  0x2e   :  { %p964_p1 = pnand %p963_p0, %p957_p11 }
  0x30   :  { %967 = shalt.err (!%p964_p1)
}
  0x31   :  { %46 = dma.hbm_to_vmem [thread:$0]  %s1263_s0, 128, %s44_s26, [#allocation6]  }
  0x32   :  { %990 = dma.done.wait [#allocation3], 256  }
  0x33   :  { %991 = vsyncadd [#allocation3], 4294967040 }
  0x34   :  { %992 = dma.done.wait [#allocation6], 128  }
  0x35   :  { %993 = vsyncadd [#allocation6], 4294967168  ;;  %v1000_v0 = vmov 0.0   ;;  %vm1001_vm0 = vmmov 0   ;;  %v1002_v1 = vmov 0   ;;  %vm97_vm1 = vcmask 64512  }
  0x36   :  { %840 = vmatprep.subr.mxu0 %v1000_v0  ;;  %842 = vmatprep.mubr.msk.f32.mxu0 %vm1001_vm0, %v1000_v0  ;;  %v91_v2 = vld [vmem:[#allocation2] sm:$0xff]  ;;  %v83_v3 = vld [vmem:[#allocation5] sm:$0xff]  ;;  %v320_v4 = vld [vmem:[#allocation2 + $0x8] sm:$0xff]  ;;  %vm172_vm2 = vcmask 261120  }
  0x37   :  { %906 = vset.pattern.permute.xlu0 %v1002_v1  ;;  %907 = vset.pattern.permute.xlu1 %v1002_v1  ;;  %v85_v5 = vld [vmem:[%s1239_s2] sm:$0xff] }
  0x38   :  { %845 = vmatprep.subr.mxu1 %v1000_v0  ;;  %847 = vmatprep.mubr.msk.f32.mxu1 %vm1001_vm0, %v1000_v0  ;;  %v87_v6 = vld [vmem:[%s1241_s4] sm:$0xff] }
  0x39   :  { %841 = vmatpush3.msra.mxu0 %v91_v2  ;;  %94 = vperm.xlu0 %906, %v85_v5   ;;  %v86_v7 = vld [vmem:[%s1240_s3] sm:$0xff] }
  0x3a   :  { %843 = vmatmul.mubr.msk.f32.vlgmr.msra.gmra.mrb[0].mxu0 %vm97_vm1, %v83_v3  ;;  %850 = vmatprep.subr.mxu0 %v1000_v0  ;;  %v88_v8 = vld [vmem:[%s1243_s6] sm:$0xff] }
  0x3b   :  { %851 = vmatpush3.msra.mxu0 %v320_v4  ;;  %852 = vmatprep.mubr.msk.f32.mxu0 %vm1001_vm0, %v1000_v0  ;;  %v89_v9 = vld [vmem:[%s1244_s7] sm:$0xff]  ;;  %s1264_s7 = sld [smem:[#allocation13_spill]] }
  0x3c   :  { %203 = vperm.xlu1 %907, %v87_v6   ;;  %v90_v10 = vld [vmem:[%s1245_s8] sm:$0xff]  ;;  %s1003_s8 = smov [#allocation7]  }
  0x3d   :  { %197 = vperm.xlu0 %906, %v86_v7   ;;  %v509_v6 = vld [vmem:[%s1246_s9] sm:$0xff]  ;;  %v510_v7 = vld [vmem:[%s1246_s9 + $0x8] sm:$0xff]  ;;  %s793_s18 = sshll.u32 %s1003_s8, 4  ;;  %s794_s18 = int_to_ptr.vmem [resolvable:$true] %s793_s18 }
  0x3e   :  { %853 = vmatmul.mubr.msk.f32.vlgmr.msra.gmra.mrb[2].mxu0 %vm97_vm1, %v83_v3  ;;  %v84_v3 = vld [vmem:[%s1242_s5] sm:$0xff]  ;;  %s968_s19 = scalar_lea.vmem %s794_s18, 256  ;;  %p973_p3 = scmp.lt.s32.totalorder %s794_s18, %s794_s18 }
  0x3f   :  { %p969_p2 = scmp.ne.s32.totalorder %s794_s18, %s968_s19  ;;  %p974_p4 = scmp.lt.s32.totalorder %s968_s19, %s968_s19 }
  0x40   :  { %209 = vperm.xlu1 %907, %v88_v8   ;;  %v882_v8 = vpack.c.bf16 %v510_v7, %v509_v6 }
  0x41   :  { %309 = vperm.xlu0 %906, %v89_v9   ;;  %v511_v9 = vld [vmem:[%s1246_s9 + $0x10] sm:$0xff]  ;;  %p975_p5 = por %p974_p4, %p973_p3 }
  0x42   :  { %883 = vmatprep.subr.bf16.mxu0 %v882_v8 }
  0x43   :  { %885 = vmatpush3.bf16.msra.mxu0 %v882_v8  ;;  %p976_p6 = pnand %p975_p5, %p969_p2 }
  0x44   :  { %315 = vperm.xlu1 %907, %v90_v10  }
  0xb8   :  { %v95_v11 = vpop.permute.xlu0 %94 }
  0xbb   :  { %v204_v63 = vpop.permute.xlu1 %203 }
  0xbc   :  { %v198_v60 = vpop.permute.xlu0 %197 }
 0x10d   :  { %v167_v12 = vpop.f32.mrb[0].mxu0 }
 0x10e   :  { %v168_v13 = vadd.f32 %v167_v12, %v95_v11  ;;  %v844_v14 = vpop.f32.mrb[1].mxu0 }
 0x110   :  { %v171_v15 = vmax.f32 %v168_v13, 0.0 }
 0x111   :  { %v387_v16 = vpop.f32.mrb[2].mxu0 }
 0x112   :  { %v173_v17 = vsel %vm172_vm2, %v171_v15, 0.0  ;;  %v388_v18 = vadd.f32 %v387_v16, %v95_v11  ;;  %v854_v19 = vpop.f32.mrb[3].mxu0  ;;  %v210_v11 = vpop.permute.xlu1 %209 }
 0x113   :  { %v174_v20 = vrot.slane %v173_v17, 4 }
 0x114   :  { %v391_v21 = vmax.f32 %v388_v18, 0.0 }
 0x115   :  { %v175_v22 = vadd.f32 %v174_v20, %v173_v17 }
 0x116   :  { %v392_v23 = vsel %vm172_vm2, %v391_v21, 0.0 }
 0x117   :  { %v176_v24 = vrot.slane %v175_v22, 2  ;;  %v393_v25 = vrot.slane %v392_v23, 4 }
 0x119   :  { %v177_v26 = vadd.f32 %v176_v24, %v175_v22  ;;  %v394_v27 = vadd.f32 %v393_v25, %v392_v23 }
 0x11b   :  { %v178_v28 = vrot.slane %v177_v26, 1  ;;  %v395_v29 = vrot.slane %v394_v27, 2 }
 0x11d   :  { %v179_v30 = vadd.f32 %v178_v28, %v177_v26  ;;  %v396_v31 = vadd.f32 %v395_v29, %v394_v27 }
 0x11f   :  { %v181_v32 = vmul.f32 0.125, %v179_v30  ;;  %v397_v33 = vrot.slane %v396_v31, 1 }
 0x121   :  { %v182_v34 = vsub.f32 %v171_v15, %v181_v32  ;;  %v398_v35 = vadd.f32 %v397_v33, %v396_v31 }
 0x123   :  { %v183_v36 = vmul.f32 %v182_v34, %v182_v34  ;;  %v399_v37 = vmul.f32 0.125, %v398_v35 }
 0x125   :  { %v184_v38 = vsel %vm172_vm2, %v183_v36, 0.0  ;;  %v400_v39 = vsub.f32 %v391_v21, %v399_v37 }
 0x126   :  { %v185_v40 = vrot.slane %v184_v38, 4 }
 0x127   :  { %v401_v41 = vmul.f32 %v400_v39, %v400_v39 }
 0x128   :  { %v186_v42 = vadd.f32 %v185_v40, %v184_v38 }
 0x129   :  { %v402_v43 = vsel %vm172_vm2, %v401_v41, 0.0 }
 0x12a   :  { %v187_v44 = vrot.slane %v186_v42, 2  ;;  %v403_v45 = vrot.slane %v402_v43, 4 }
 0x12c   :  { %v188_v46 = vadd.f32 %v187_v44, %v186_v42  ;;  %v404_v47 = vadd.f32 %v403_v45, %v402_v43 }
 0x12e   :  { %v189_v48 = vrot.slane %v188_v46, 1  ;;  %v405_v49 = vrot.slane %v404_v47, 2 }
 0x130   :  { %v190_v50 = vadd.f32 %v189_v48, %v188_v46  ;;  %v406_v51 = vadd.f32 %v405_v49, %v404_v47 }
 0x132   :  { %v191_v52 = vmul.f32 0.125, %v190_v50  ;;  %v407_v53 = vrot.slane %v406_v51, 1 }
 0x134   :  { %v192_v54 = vadd.f32 1e-05, %v191_v52  ;;  %v408_v55 = vadd.f32 %v407_v53, %v406_v51 }
 0x136   :  { %908 = vrsqrt.f32 %v192_v54  ;;  %v409_v56 = vmul.f32 0.125, %v408_v55 }
 0x138   :  { %v410_v57 = vadd.f32 1e-05, %v409_v56 }
 0x13a   :  { %910 = vrsqrt.f32 %v410_v57 }
 0x140   :  { %v909_v58 = vpop.eup %908 }
 0x141   :  { %v194_v59 = vmul.f32 %v909_v58, %v182_v34 }
 0x143   :  { %v200_v61 = vmul.f32 %v198_v60, %v194_v59 }
 0x144   :  { %v911_v62 = vpop.eup %910 }
 0x145   :  { %v412_v1 = vmul.f32 %v911_v62, %v400_v39  ;;  %v206_v2 = vadd.f32 %v204_v63, %v200_v61 }
 0x147   :  { %v413_v4 = vmul.f32 %v412_v1, %v198_v60  ;;  %846 = vmatpush3.msra.mxu1 %v206_v2  ;;  %v310_v60 = vpop.permute.xlu0 %309 }
 0x148   :  { %848 = vmatmul.mubr.msk.f32.vlgmr.msra.gmra.mrb[0].mxu1 %vm97_vm1, %v84_v3  ;;  %855 = vmatprep.subr.mxu1 %v1000_v0 }
 0x149   :  { %v414_v5 = vadd.f32 %v413_v4, %v204_v63  ;;  %857 = vmatprep.mubr.msk.f32.mxu1 %vm1001_vm0, %v1000_v0  ;;  %v512_v0 = vld [vmem:[%s1246_s9 + $0x18] sm:$0xff]  ;;  %v316_v63 = vpop.permute.xlu1 %315 }
 0x14a   :  { %v886_v10 = vpack.c.bf16 %v512_v0, %v511_v9 }
 0x14b   :  { %856 = vmatpush3.msra.mxu1 %v414_v5  ;;  %v810_v5 = vld [vmem:[%s1247_s10] ss:$0 sm:$0xff] }
 0x14c   :  { %858 = vmatmul.mubr.msk.f32.vlgmr.msra.gmra.mrb[2].mxu1 %vm97_vm1, %v84_v3  ;;  %887 = vmatprep.subr.bf16.mxu0 %v886_v10 }
 0x14d   :  { %889 = vmatpush3.bf16.msra.mxu0 %v886_v10 }
 0x21b   :  { %v281_v12 = vpop.f32.mrb[0].mxu1 }
 0x21c   :  { %v282_v13 = vadd.f32 %v281_v12, %v210_v11  ;;  %v849_v14 = vpop.f32.mrb[1].mxu1 }
 0x21e   :  { %v285_v15 = vmax.f32 %v282_v13, 0.0 }
 0x21f   :  { %v481_v16 = vpop.f32.mrb[2].mxu1 }
 0x220   :  { %v286_v17 = vsel %vm172_vm2, %v285_v15, 0.0  ;;  %v482_v18 = vadd.f32 %v481_v16, %v210_v11  ;;  %v859_v19 = vpop.f32.mrb[3].mxu1 }
 0x221   :  { %v287_v20 = vrot.slane %v286_v17, 4 }
 0x222   :  { %v485_v21 = vmax.f32 %v482_v18, 0.0 }
 0x223   :  { %v288_v22 = vadd.f32 %v287_v20, %v286_v17 }
 0x224   :  { %v486_v23 = vsel %vm172_vm2, %v485_v21, 0.0 }
 0x225   :  { %v289_v24 = vrot.slane %v288_v22, 2  ;;  %v487_v25 = vrot.slane %v486_v23, 4 }
 0x227   :  { %v290_v26 = vadd.f32 %v289_v24, %v288_v22  ;;  %v488_v27 = vadd.f32 %v487_v25, %v486_v23  ;;  %v648_v23 = vld [vmem:[%s1250_s13] sm:$0xff]  ;;  %v649_v24 = vld [vmem:[%s1250_s13 + $0x8] sm:$0xff] }
 0x228   :  { %v890_v25 = vpack.c.bf16 %v649_v24, %v648_v23 }
 0x229   :  { %v291_v28 = vrot.slane %v290_v26, 1  ;;  %v489_v29 = vrot.slane %v488_v27, 2 }
 0x22a   :  { %891 = vmatprep.subr.bf16.mxu1 %v890_v25 }
 0x22b   :  { %v292_v30 = vadd.f32 %v291_v28, %v290_v26  ;;  %v490_v31 = vadd.f32 %v489_v29, %v488_v27  ;;  %893 = vmatpush3.bf16.msra.mxu1 %v890_v25  ;;  %v650_v26 = vld [vmem:[%s1250_s13 + $0x10] sm:$0xff]  ;;  %v651_v27 = vld [vmem:[%s1250_s13 + $0x18] sm:$0xff] }
 0x22c   :  { %v894_v28 = vpack.c.bf16 %v651_v27, %v650_v26 }
 0x22d   :  { %v293_v32 = vmul.f32 0.125, %v292_v30  ;;  %v491_v33 = vrot.slane %v490_v31, 1 }
 0x22e   :  { %895 = vmatprep.subr.bf16.mxu1 %v894_v28 }
 0x22f   :  { %v294_v34 = vsub.f32 %v285_v15, %v293_v32  ;;  %v492_v35 = vadd.f32 %v491_v33, %v490_v31  ;;  %897 = vmatpush3.bf16.msra.mxu1 %v894_v28 }
 0x231   :  { %v295_v36 = vmul.f32 %v294_v34, %v294_v34  ;;  %v493_v37 = vmul.f32 0.125, %v492_v35 }
 0x233   :  { %v296_v38 = vsel %vm172_vm2, %v295_v36, 0.0  ;;  %v494_v39 = vsub.f32 %v485_v21, %v493_v37  ;;  %v813_v36 = vld [vmem:[%s1248_s11] ss:$0 sm:$0xff] }
 0x234   :  { %v297_v40 = vrot.slane %v296_v38, 4 }
 0x235   :  { %v495_v41 = vmul.f32 %v494_v39, %v494_v39 }
 0x236   :  { %v298_v42 = vadd.f32 %v297_v40, %v296_v38  ;;  %v814_v38 = vld [vmem:[%s1249_s12] ss:$0 sm:$0xff] }
 0x237   :  { %v496_v43 = vsel %vm172_vm2, %v495_v41, 0.0 }
 0x238   :  { %v299_v44 = vrot.slane %v298_v42, 2  ;;  %v497_v45 = vrot.slane %v496_v43, 4 }
 0x23a   :  { %v300_v46 = vadd.f32 %v299_v44, %v298_v42  ;;  %v498_v47 = vadd.f32 %v497_v45, %v496_v43  ;;  %v815_v45 = vld [vmem:[%s1251_s14] ss:$0 sm:$0xff] }
 0x23c   :  { %v301_v48 = vrot.slane %v300_v46, 1  ;;  %v499_v49 = vrot.slane %v498_v47, 2 }
 0x23e   :  { %v302_v50 = vadd.f32 %v301_v48, %v300_v46  ;;  %v500_v51 = vadd.f32 %v499_v49, %v498_v47 }
 0x240   :  { %v303_v52 = vmul.f32 0.125, %v302_v50  ;;  %v501_v53 = vrot.slane %v500_v51, 1 }
 0x242   :  { %v304_v54 = vadd.f32 1e-05, %v303_v52  ;;  %v502_v55 = vadd.f32 %v501_v53, %v500_v51 }
 0x244   :  { %912 = vrsqrt.f32 %v304_v54  ;;  %v503_v56 = vmul.f32 0.125, %v502_v55 }
 0x246   :  { %v504_v57 = vadd.f32 1e-05, %v503_v56 }
 0x248   :  { %914 = vrsqrt.f32 %v504_v57 }
 0x24e   :  { %v913_v58 = vpop.eup %912 }
 0x24f   :  { %v306_v59 = vmul.f32 %v913_v58, %v294_v34 }
 0x251   :  { %v312_v61 = vmul.f32 %v310_v60, %v306_v59 }
 0x252   :  { %v915_v62 = vpop.eup %914 }
 0x253   :  { %v506_v1 = vmul.f32 %v915_v62, %v494_v39  ;;  %v318_v2 = vadd.f32 %v316_v63, %v312_v61 }
 0x255   :  { %v507_v3 = vmul.f32 %v506_v1, %v310_v60  ;;  %868 = vmatprep.mubr.msk.f32.mxu0 %vm172_vm2, %v318_v2 }
 0x257   :  { %v508_v4 = vadd.f32 %v507_v3, %v316_v63 }
 0x259   :  { %869 = vmatmul.mubr.msk.f32.vlgmr.msra.gmra.mrb[4].mxu0 %vm172_vm2, %v508_v4 }
 0x32c   :  { %v870_v6 = vpop.f32.mrb[4].mxu0 }
 0x32d   :  { %v598_v7 = vadd.f32 %v870_v6, %v810_v5  ;;  %v592_v8 = vpop.f32.mrb[5].mxu0 }
 0x32e   :  { %v593_v9 = vadd.f32 %v810_v5, %v592_v8  ;;  %v818_v8 = vld [vmem:[%s1252_s15] ss:$0 sm:$0xff] }
 0x32f   :  { %v602_v0 = vmax.f32 %v598_v7, 0.0 }
 0x330   :  { %v601_v10 = vmax.f32 %v593_v9, 0.0 }
 0x331   :  { %v608_v11 = vsel %vm172_vm2, %v602_v0, 0.0 }
 0x332   :  { %609 = vadd.xlane.f32.xlu1 %v608_v11  ;;  %v605_v12 = vsel %vm172_vm2, %v601_v10, 0.0  ;;  %v819_v11 = vld [vmem:[%s1264_s7] ss:$0 sm:$0xff] }
 0x333   :  { %606 = vadd.xlane.f32.xlu0 %v605_v12 }
 0x3bf   :  { %v610_v13 = vpop.xlane.xlu1 %609 }
 0x3c0   :  { %v613_v14 = vmul.f32 0.03125, %v610_v13  ;;  %v607_v15 = vpop.xlane.xlu0 %606 }
 0x3c1   :  { %v612_v16 = vmul.f32 0.03125, %v607_v15 }
 0x3c2   :  { %v615_v17 = vsub.f32 %v602_v0, %v613_v14 }
 0x3c3   :  { %v614_v18 = vsub.f32 %v601_v10, %v612_v16 }
 0x3c4   :  { %v617_v21 = vmul.f32 %v615_v17, %v615_v17 }
 0x3c5   :  { %v616_v19 = vmul.f32 %v614_v18, %v614_v18 }
 0x3c6   :  { %v621_v22 = vsel %vm172_vm2, %v617_v21, 0.0 }
 0x3c7   :  { %v618_v20 = vsel %vm172_vm2, %v616_v19, 0.0 }
 0x3c8   :  { %619 = vadd.xlane.f32.xlu0 %v618_v20 }
 0x3cc   :  { %622 = vadd.xlane.f32.xlu0 %v621_v22 }
 0x455   :  { %v620_v29 = vpop.xlane.xlu0 %619 }
 0x456   :  { %v624_v30 = vmul.f32 0.03125, %v620_v29 }
 0x458   :  { %v626_v31 = vadd.f32 1e-05, %v624_v30 }
 0x459   :  { %v623_v32 = vpop.xlane.xlu0 %622 }
 0x45a   :  { %916 = vrsqrt.f32 %v626_v31  ;;  %v625_v33 = vmul.f32 0.03125, %v623_v32 }
 0x45c   :  { %v627_v34 = vadd.f32 1e-05, %v625_v33 }
 0x45e   :  { %918 = vrsqrt.f32 %v627_v34 }
 0x464   :  { %v917_v35 = vpop.eup %916 }
 0x465   :  { %v630_v37 = vmul.f32 %v917_v35, %v614_v18 }
 0x467   :  { %v638_v39 = vmul.f32 %v813_v36, %v630_v37 }
 0x468   :  { %v919_v40 = vpop.eup %918 }
 0x469   :  { %v631_v41 = vmul.f32 %v919_v40, %v615_v17  ;;  %v646_v42 = vadd.f32 %v814_v38, %v638_v39 }
 0x46b   :  { %v639_v43 = vmul.f32 %v813_v36, %v631_v41  ;;  %879 = vmatprep.mubr.msk.f32.mxu1 %vm172_vm2, %v646_v42 }
 0x46d   :  { %v647_v44 = vadd.f32 %v814_v38, %v639_v43 }
 0x46f   :  { %880 = vmatmul.mubr.msk.f32.vlgmr.msra.gmra.mrb[4].mxu1 %vm172_vm2, %v647_v44 }
 0x542   :  { %v881_v46 = vpop.f32.mrb[4].mxu1 }
 0x543   :  { %v737_v47 = vadd.f32 %v881_v46, %v815_v45  ;;  %v731_v48 = vpop.f32.mrb[5].mxu1 }
 0x544   :  { %v732_v49 = vadd.f32 %v815_v45, %v731_v48 }
 0x545   :  { %v741_v50 = vmax.f32 %v737_v47, 0.0 }
 0x546   :  { %v740_v51 = vmax.f32 %v732_v49, 0.0 }
 0x547   :  { %v747_v52 = vsel %vm172_vm2, %v741_v50, 0.0 }
 0x548   :  { %748 = vadd.xlane.f32.xlu0 %v747_v52  ;;  %v744_v53 = vsel %vm172_vm2, %v740_v51, 0.0 }
 0x549   :  { %745 = vadd.xlane.f32.xlu1 %v744_v53 }
 0x5d5   :  { %v749_v54 = vpop.xlane.xlu0 %748 }
 0x5d6   :  { %v751_v55 = vmul.f32 0.03125, %v749_v54  ;;  %v746_v56 = vpop.xlane.xlu1 %745 }
 0x5d7   :  { %v750_v57 = vmul.f32 0.03125, %v746_v56 }
 0x5d8   :  { %v753_v58 = vsub.f32 %v741_v50, %v751_v55 }
 0x5d9   :  { %v752_v59 = vsub.f32 %v740_v51, %v750_v57 }
 0x5da   :  { %v755_v60 = vmul.f32 %v753_v58, %v753_v58 }
 0x5db   :  { %v754_v61 = vmul.f32 %v752_v59, %v752_v59 }
 0x5dc   :  { %v759_v62 = vsel %vm172_vm2, %v755_v60, 0.0 }
 0x5dd   :  { %760 = vadd.xlane.f32.xlu0 %v759_v62  ;;  %v756_v63 = vsel %vm172_vm2, %v754_v61, 0.0 }
 0x5de   :  { %757 = vadd.xlane.f32.xlu1 %v756_v63 }
 0x66a   :  { %v761_v1 = vpop.xlane.xlu0 %760 }
 0x66b   :  { %v763_v2 = vmul.f32 0.03125, %v761_v1  ;;  %v758_v3 = vpop.xlane.xlu1 %757 }
 0x66c   :  { %v762_v4 = vmul.f32 0.03125, %v758_v3 }
 0x66d   :  { %v765_v5 = vadd.f32 1e-05, %v763_v2 }
 0x66e   :  { %v764_v6 = vadd.f32 1e-05, %v762_v4 }
 0x66f   :  { %920 = vrsqrt.f32 %v765_v5 }
 0x670   :  { %922 = vrsqrt.f32 %v764_v6 }
 0x679   :  { %v921_v7 = vpop.eup %920 }
 0x67a   :  { %v923_v9 = vpop.eup %922  ;;  %v769_v0 = vmul.f32 %v921_v7, %v753_v58 }
 0x67b   :  { %v768_v10 = vmul.f32 %v923_v9, %v752_v59 }
 0x67c   :  { %v777_v12 = vmul.f32 %v818_v8, %v769_v0 }
 0x67d   :  { %v776_v13 = vmul.f32 %v818_v8, %v768_v10 }
 0x67e   :  { %v785_v14 = vadd.f32 %v819_v11, %v777_v12 }
 0x67f   :  { %v784_v15 = vadd.f32 %v819_v11, %v776_v13 }
 0x680   :  { %787 = vst.msk [vmem:[#allocation7 + $0x8] sm:$0xff] %vm172_vm2, %v785_v14 }
 0x681   :  { %786 = vst.msk [vmem:[#allocation7] sm:$0xff] %vm172_vm2, %v784_v15 }
 0x682   :  { %979 = shalt.err (!%p976_p6)
}
 0x683   :  { %s1265_s1 = sld [smem:[#allocation14_spill]] }
 0x689   :  { %s980_s25 = scalar_lea.hbm %s1265_s1, 256 }
 0x68a   :  { %p981_p7 = scmp.ne.s32.totalorder %s1265_s1, %s980_s25  ;;  %p984_p8 = scmp.lt.u32.totalorder %s980_s25, %s1265_s1 }
 0x68c   :  { %p986_p9 = pnand %p984_p8, %p981_p7 }
 0x68e   :  { %989 = shalt.err (!%p986_p9)
}
 0x68f   :  { %799 = dma.vmem_to_hbm [thread:$0]  %s794_s18, 256, %s1265_s1, [#allocation4], %s997_s20, %s997_s20, %s998_s21  }
 0x690   :  { %994 = dma.done.wait [#allocation4], 256  }
 0x691   :  { %995 = vsyncadd [#allocation4], 4294967040 }
 0x692   :  { %803 = vsyncpa [#allocation3], 1 }
 0x693   :  { %804 = vsyncpa [#allocation6], 1 }
 0x694   :  { %805 = vsyncpa [#allocation4], 1 }

</bundles_post_ra>
